<compile_context>
chip_gen: v7x
topology: tpu7x:2x2x1
jax: 0.10.0
libtpu: 0.0.40
codegen_flags: <defaults>
</compile_context>

<pallas_src>
import jax
import jax.numpy as jnp
from jax import lax
from jax.experimental import pallas as pl
from jax.experimental.pallas import tpu as pltpu

K = 5          # top-k size fixed by the PyTorch module
LANE = 128
SUBLANE = 8


def _round_up(x, m):
    return (x + m - 1) // m * m


def _vmem_budget_bytes():
    cap = 64 * 1024 * 1024
    try:
        info = pltpu.get_tpu_info()
        cap = int(getattr(info, "vmem_capacity_bytes", cap)) or cap
    except Exception:
        pass
    # ~3/4 of physical VMEM: 48 MiB on 64 MiB parts (v7x), 96 MiB on 128 MiB
    # parts (v5e/v6e); leaves headroom for scratch / pipeline bookkeeping.
    return (cap * 3) // 4


def _choose_row_tile(num_rows, n_blk, in_itemsize, sel_itemsize, row_align,
                     vmem_budget):
    # Per block row we pay: double-buffered input (native dtype) plus roughly
    # a working copy of the selection array and its temps.
    per_row = n_blk * (2 * in_itemsize + 2 * sel_itemsize)
    cap_rows = max(row_align, (vmem_budget // per_row) // row_align * row_align)
    rt = min(cap_rows, 1024, _round_up(num_rows, row_align))
    # Keep >= 4 grid steps when there is enough work (2 TCs x pipeline overlap).
    if num_rows >= 4 * row_align:
        steps_cap = max(row_align,
                        (pl.cdiv(num_rows, 4) // row_align) * row_align)
        rt = min(rt, steps_cap)
    return max(row_align, rt)


def _make_topk_pool_kernel(n_valid, n_blk, k):
    need_mask = n_blk != n_valid
    inv_k = 1.0 / float(k)

    def kernel(x_ref, o_ref):
        v = x_ref[...]                                   # (rt, n_blk) native dtype
        if v.dtype != jnp.float32 and v.dtype != jnp.bfloat16:
            v = v.astype(jnp.float32)                    # e.g. fp16/int inputs
        neg_inf = jnp.asarray(-jnp.inf, dtype=v.dtype)

        if need_mask:                                    # ragged lane tail -> -inf
            lane = lax.broadcasted_iota(jnp.int32, v.shape, 1)
            v = jnp.where(lane < n_valid, v, neg_inf)

        rows = v.shape[0]
        acc = jnp.zeros((rows, 1), jnp.float32)
        remaining = jnp.full((rows, 1), float(k), jnp.float32)

        for it in range(k):                              # static unroll, k == 5
            m = jnp.max(v, axis=-1, keepdims=True)       # current max (rt, 1)
            is_max = v == m
            cnt = jnp.sum(is_max.astype(jnp.float32), axis=-1, keepdims=True)
            take = jnp.minimum(cnt, remaining)           # duplicate-safe count
            # Guard: once remaining == 0, a (now -inf) max must contribute 0,
            # not -inf * 0 = NaN.  NaN maxima still propagate (take == 0).
            m32 = jnp.where(remaining > 0, m.astype(jnp.float32), 0.0)
            acc = acc + m32 * take
            remaining = remaining - take
            if it + 1 < k:                               # last knockout is dead work
                v = jnp.where(is_max, neg_inf, v)

        o_ref[...] = (acc * jnp.float32(inv_k)).astype(o_ref.dtype)

    return kernel


@jax.jit
def topk_pool(x):
    """x: (b, c, h, w) -> (b, c): mean of the top-5 spatial activations."""
    b, c, h, w = x.shape
    n = h * w
    if n < K:
        raise ValueError(f"need at least {K} spatial positions, got {n}")

    num_rows = b * c
    x2d = x.reshape(num_rows, n)         # free reshape; native dtype, no copies

    n_blk = _round_up(n, LANE)
    in_itemsize = jnp.dtype(x.dtype).itemsize
    keep_native = (x.dtype == jnp.float32) or (x.dtype == jnp.bfloat16)
    sel_itemsize = in_itemsize if keep_native else 4
    row_align = max(SUBLANE, 32 // max(1, in_itemsize))  # 8 for f32, 16 for bf16
    out_dtype = x.dtype if jnp.issubdtype(x.dtype, jnp.floating) else jnp.float32

    vmem_budget = _vmem_budget_bytes()
    rt = _choose_row_tile(num_rows, n_blk, in_itemsize, sel_itemsize,
                          row_align, vmem_budget)

    out = pl.pallas_call(
        _make_topk_pool_kernel(n, n_blk, K),
        out_shape=jax.ShapeDtypeStruct((num_rows, 1), out_dtype),
        grid_spec=pltpu.PrefetchScalarGridSpec(
            num_scalar_prefetch=0,
            grid=(pl.cdiv(num_rows, rt),),
            in_specs=[pl.BlockSpec((rt, n_blk), lambda i: (i, 0))],
            out_specs=pl.BlockSpec((rt, 1), lambda i: (i, 0)),
        ),
        compiler_params=pltpu.CompilerParams(
            dimension_semantics=("parallel",),
            vmem_limit_bytes=vmem_budget),
    )(x2d)

    return out.reshape(b, c)


def topk_pool_reference(x):
    """Pure-JAX reference mirroring the PyTorch forward exactly."""
    b, c = x.shape[:2]
    xf = x.reshape(b, c, -1)
    topv, _ = lax.top_k(xf, K)
    return jnp.mean(topv, axis=-1).astype(x.dtype)


if __name__ == "__main__":
    key = jax.random.PRNGKey(0)
    b, c, h, w = 2, 4, 16, 16
    x = jax.random.normal(key, (b, c, h, w), dtype=jnp.float32)

    out = jax.block_until_ready(topk_pool(x))
    ref = topk_pool_reference(x)
    assert out.shape == (b, c)
    assert jnp.allclose(out, ref, atol=1e-5, rtol=1e-5)

    # Non-128-multiple spatial size + lots of duplicate values (tie handling,
    # ragged lane mask, ragged row tail).
    x2 = jnp.round(
        jax.random.normal(jax.random.PRNGKey(1), (3, 4, 7, 9), jnp.float32) * 2.0)
    out2 = jax.block_until_ready(topk_pool(x2))
    assert jnp.allclose(out2, topk_pool_reference(x2), atol=1e-5, rtol=1e-5)

    # bf16 path: native-dtype load, bf16 selection, f32 accumulation, bf16 store.
    x3 = jax.random.normal(jax.random.PRNGKey(2), (2, 8, 10, 10), jnp.bfloat16)
    out3 = jax.block_until_ready(topk_pool(x3))
    ref3 = topk_pool_reference(x3.astype(jnp.float32))
    assert out3.dtype == jnp.bfloat16
    assert jnp.allclose(out3.astype(jnp.float32), ref3, atol=5e-2, rtol=5e-2)

    print("KERNEL_OK")
</pallas_src>

<mosaic_0001>
module attributes {stable_mosaic.version = 11 : i64} {
  func.func @kernel(%arg0: i32, %arg1: memref<8x256xf32, #tpu.memory_space<vmem>>, %arg2: memref<8x1xf32, #tpu.memory_space<vmem>>) attributes {dimension_semantics = [#tpu.dimension_semantics<parallel>], iteration_bounds = array<i64: 1>, scalar_prefetch = 0 : i64, scratch_operands = 0 : i64, tpu.core_type = #tpu.core_type<tc>, window_params = [{transform_indices = @transform_0, window_bounds = array<i64: 8, 256>}, {transform_indices = @transform_1, window_bounds = array<i64: 8, 1>}]} {
    %c0 = arith.constant 0 : index
    %c0_0 = arith.constant 0 : index
    %0 = vector.load %arg1[%c0, %c0_0] : memref<8x256xf32, #tpu.memory_space<vmem>>, vector<8x256xf32>
    %cst = arith.constant 0.000000e+00 : f32
    %1 = vector.broadcast %cst : f32 to vector<8x1xf32>
    %cst_1 = arith.constant 5.000000e+00 : f32
    %2 = vector.broadcast %cst_1 : f32 to vector<8x1xf32>
    %cst_2 = arith.constant dense<0xFF800000> : vector<8xf32>
    %3 = vector.multi_reduction <maximumf>, %0, %cst_2 [1] : vector<8x256xf32> to vector<8xf32>
    %4 = vector.shape_cast %3 : vector<8xf32> to vector<8x1xf32>
    %5 = vector.broadcast %4 : vector<8x1xf32> to vector<8x256xf32>
    %6 = arith.cmpf oeq, %0, %5 : vector<8x256xf32>
    %7 = arith.extui %6 : vector<8x256xi1> to vector<8x256xi32>
    %8 = arith.sitofp %7 : vector<8x256xi32> to vector<8x256xf32>
    %cst_3 = arith.constant dense<0.000000e+00> : vector<8xf32>
    %9 = vector.multi_reduction <add>, %8, %cst_3 [1] : vector<8x256xf32> to vector<8xf32>
    %10 = vector.shape_cast %9 : vector<8xf32> to vector<8x1xf32>
    %11 = arith.minimumf %10, %2 : vector<8x1xf32>
    %cst_4 = arith.constant 0.000000e+00 : f32
    %12 = vector.broadcast %cst_4 : f32 to vector<8x1xf32>
    %13 = arith.cmpf ogt, %2, %12 : vector<8x1xf32>
    %cst_5 = arith.constant 0.000000e+00 : f32
    %14 = vector.broadcast %cst_5 : f32 to vector<8x1xf32>
    %15 = arith.select %13, %4, %14 : vector<8x1xi1>, vector<8x1xf32>
    %16 = arith.mulf %15, %11 : vector<8x1xf32>
    %17 = arith.addf %1, %16 : vector<8x1xf32>
    %18 = arith.subf %2, %11 : vector<8x1xf32>
    %cst_6 = arith.constant 0xFF800000 : f32
    %19 = vector.broadcast %cst_6 : f32 to vector<8x256xf32>
    %20 = arith.select %6, %19, %0 : vector<8x256xi1>, vector<8x256xf32>
    %cst_7 = arith.constant dense<0xFF800000> : vector<8xf32>
    %21 = vector.multi_reduction <maximumf>, %20, %cst_7 [1] : vector<8x256xf32> to vector<8xf32>
    %22 = vector.shape_cast %21 : vector<8xf32> to vector<8x1xf32>
    %23 = vector.broadcast %22 : vector<8x1xf32> to vector<8x256xf32>
    %24 = arith.cmpf oeq, %20, %23 : vector<8x256xf32>
    %25 = arith.extui %24 : vector<8x256xi1> to vector<8x256xi32>
    %26 = arith.sitofp %25 : vector<8x256xi32> to vector<8x256xf32>
    %cst_8 = arith.constant dense<0.000000e+00> : vector<8xf32>
    %27 = vector.multi_reduction <add>, %26, %cst_8 [1] : vector<8x256xf32> to vector<8xf32>
    %28 = vector.shape_cast %27 : vector<8xf32> to vector<8x1xf32>
    %29 = arith.minimumf %28, %18 : vector<8x1xf32>
    %cst_9 = arith.constant 0.000000e+00 : f32
    %30 = vector.broadcast %cst_9 : f32 to vector<8x1xf32>
    %31 = arith.cmpf ogt, %18, %30 : vector<8x1xf32>
    %cst_10 = arith.constant 0.000000e+00 : f32
    %32 = vector.broadcast %cst_10 : f32 to vector<8x1xf32>
    %33 = arith.select %31, %22, %32 : vector<8x1xi1>, vector<8x1xf32>
    %34 = arith.mulf %33, %29 : vector<8x1xf32>
    %35 = arith.addf %17, %34 : vector<8x1xf32>
    %36 = arith.subf %18, %29 : vector<8x1xf32>
    %cst_11 = arith.constant 0xFF800000 : f32
    %37 = vector.broadcast %cst_11 : f32 to vector<8x256xf32>
    %38 = arith.select %24, %37, %20 : vector<8x256xi1>, vector<8x256xf32>
    %cst_12 = arith.constant dense<0xFF800000> : vector<8xf32>
    %39 = vector.multi_reduction <maximumf>, %38, %cst_12 [1] : vector<8x256xf32> to vector<8xf32>
    %40 = vector.shape_cast %39 : vector<8xf32> to vector<8x1xf32>
    %41 = vector.broadcast %40 : vector<8x1xf32> to vector<8x256xf32>
    %42 = arith.cmpf oeq, %38, %41 : vector<8x256xf32>
    %43 = arith.extui %42 : vector<8x256xi1> to vector<8x256xi32>
    %44 = arith.sitofp %43 : vector<8x256xi32> to vector<8x256xf32>
    %cst_13 = arith.constant dense<0.000000e+00> : vector<8xf32>
    %45 = vector.multi_reduction <add>, %44, %cst_13 [1] : vector<8x256xf32> to vector<8xf32>
    %46 = vector.shape_cast %45 : vector<8xf32> to vector<8x1xf32>
    %47 = arith.minimumf %46, %36 : vector<8x1xf32>
    %cst_14 = arith.constant 0.000000e+00 : f32
    %48 = vector.broadcast %cst_14 : f32 to vector<8x1xf32>
    %49 = arith.cmpf ogt, %36, %48 : vector<8x1xf32>
    %cst_15 = arith.constant 0.000000e+00 : f32
    %50 = vector.broadcast %cst_15 : f32 to vector<8x1xf32>
    %51 = arith.select %49, %40, %50 : vector<8x1xi1>, vector<8x1xf32>
    %52 = arith.mulf %51, %47 : vector<8x1xf32>
    %53 = arith.addf %35, %52 : vector<8x1xf32>
    %54 = arith.subf %36, %47 : vector<8x1xf32>
    %cst_16 = arith.constant 0xFF800000 : f32
    %55 = vector.broadcast %cst_16 : f32 to vector<8x256xf32>
    %56 = arith.select %42, %55, %38 : vector<8x256xi1>, vector<8x256xf32>
    %cst_17 = arith.constant dense<0xFF800000> : vector<8xf32>
    %57 = vector.multi_reduction <maximumf>, %56, %cst_17 [1] : vector<8x256xf32> to vector<8xf32>
    %58 = vector.shape_cast %57 : vector<8xf32> to vector<8x1xf32>
    %59 = vector.broadcast %58 : vector<8x1xf32> to vector<8x256xf32>
    %60 = arith.cmpf oeq, %56, %59 : vector<8x256xf32>
    %61 = arith.extui %60 : vector<8x256xi1> to vector<8x256xi32>
    %62 = arith.sitofp %61 : vector<8x256xi32> to vector<8x256xf32>
    %cst_18 = arith.constant dense<0.000000e+00> : vector<8xf32>
    %63 = vector.multi_reduction <add>, %62, %cst_18 [1] : vector<8x256xf32> to vector<8xf32>
    %64 = vector.shape_cast %63 : vector<8xf32> to vector<8x1xf32>
    %65 = arith.minimumf %64, %54 : vector<8x1xf32>
    %cst_19 = arith.constant 0.000000e+00 : f32
    %66 = vector.broadcast %cst_19 : f32 to vector<8x1xf32>
    %67 = arith.cmpf ogt, %54, %66 : vector<8x1xf32>
    %cst_20 = arith.constant 0.000000e+00 : f32
    %68 = vector.broadcast %cst_20 : f32 to vector<8x1xf32>
    %69 = arith.select %67, %58, %68 : vector<8x1xi1>, vector<8x1xf32>
    %70 = arith.mulf %69, %65 : vector<8x1xf32>
    %71 = arith.addf %53, %70 : vector<8x1xf32>
    %72 = arith.subf %54, %65 : vector<8x1xf32>
    %cst_21 = arith.constant 0xFF800000 : f32
    %73 = vector.broadcast %cst_21 : f32 to vector<8x256xf32>
    %74 = arith.select %60, %73, %56 : vector<8x256xi1>, vector<8x256xf32>
    %cst_22 = arith.constant dense<0xFF800000> : vector<8xf32>
    %75 = vector.multi_reduction <maximumf>, %74, %cst_22 [1] : vector<8x256xf32> to vector<8xf32>
    %76 = vector.shape_cast %75 : vector<8xf32> to vector<8x1xf32>
    %77 = vector.broadcast %76 : vector<8x1xf32> to vector<8x256xf32>
    %78 = arith.cmpf oeq, %74, %77 : vector<8x256xf32>
    %79 = arith.extui %78 : vector<8x256xi1> to vector<8x256xi32>
    %80 = arith.sitofp %79 : vector<8x256xi32> to vector<8x256xf32>
    %cst_23 = arith.constant dense<0.000000e+00> : vector<8xf32>
    %81 = vector.multi_reduction <add>, %80, %cst_23 [1] : vector<8x256xf32> to vector<8xf32>
    %82 = vector.shape_cast %81 : vector<8xf32> to vector<8x1xf32>
    %83 = arith.minimumf %82, %72 : vector<8x1xf32>
    %cst_24 = arith.constant 0.000000e+00 : f32
    %84 = vector.broadcast %cst_24 : f32 to vector<8x1xf32>
    %85 = arith.cmpf ogt, %72, %84 : vector<8x1xf32>
    %cst_25 = arith.constant 0.000000e+00 : f32
    %86 = vector.broadcast %cst_25 : f32 to vector<8x1xf32>
    %87 = arith.select %85, %76, %86 : vector<8x1xi1>, vector<8x1xf32>
    %88 = arith.mulf %87, %83 : vector<8x1xf32>
    %89 = arith.addf %71, %88 : vector<8x1xf32>
    %cst_26 = arith.constant 2.000000e-01 : f32
    %90 = vector.broadcast %cst_26 : f32 to vector<8x1xf32>
    %91 = arith.mulf %89, %90 : vector<8x1xf32>
    %c0_27 = arith.constant 0 : index
    %c0_28 = arith.constant 0 : index
    %92 = vector.load %arg2[%c0_27, %c0_28] : memref<8x1xf32, #tpu.memory_space<vmem>>, vector<8x1xf32>
    tpu.vector_store %arg2[%c0_27, %c0_28], %91 {strides = array<i32>} : memref<8x1xf32, #tpu.memory_space<vmem>>, vector<8x1xf32>,
    return
  }
  func.func @transform_0(%arg0: i32) -> (i32, i32) {
    %c0_i32 = arith.constant 0 : i32
    %c0_i32_0 = arith.constant 0 : i32
    return %arg0, %c0_i32 : i32, i32
  }
  func.func @transform_1(%arg0: i32) -> (i32, i32) {
    %c0_i32 = arith.constant 0 : i32
    %c0_i32_0 = arith.constant 0 : i32
    return %arg0, %c0_i32 : i32, i32
  }
}

</mosaic_0001>

<bundles_post_ra>
// kernel: topk_pool.1
= control target key start
LH: loop header
LB: loop body
LE: loop exit
PB: predicated region body
PF: predicated region fallthrough
CT: control target
= control target key end

     0   :  { %v125_v6 = vmov 0.0   ;;  %vm108_vm14 = vcmask 7168   ;;  %s150_s0 = inlined_call_operand.vmem [shape: f32[8,256], index: 0, kind: input, shape index: {}]   ;;  %s151_s1 = inlined_call_operand.vmem [shape: f32[8,1], index: 1, kind: output, shape index: {}]  }
   0x1   :  { %v8_v0 = vld [vmem:[%s150_s0] sm:$0xff]  ;;  %v9_v1 = vld [vmem:[%s150_s0 + $0x8] sm:$0xff] }
   0x2   :  { %v10_v2 = vmax.f32 %v8_v0, %v9_v1 }
   0x4   :  { %11 = vmax.xlane.f32.xlu0 %v10_v2 }
  0x91   :  { %v142_v3 = vpop.xlane.xlu0 %11 }
  0x92   :  { %vm13_vm0 = vcmp.eq.f32.partialorder %v8_v0, %v142_v3  ;;  %vm14_vm1 = vcmp.eq.f32.partialorder %v9_v1, %v142_v3 }
  0x93   :  { %v28_v4 = vsel %vm13_vm0, -inf, %v8_v0  ;;  %v29_v5 = vsel %vm14_vm1, -inf, %v9_v1  ;;  %v114_v7 = vsel %vm13_vm0, 1.0, %v125_v6  ;;  %v115_v8 = vsel %vm14_vm1, 1.0, %v125_v6 }
  0x94   :  { %v30_v9 = vmax.f32 %v28_v4, %v29_v5  ;;  %v19_v10 = vadd.f32 %v115_v8, %v114_v7 }
  0x96   :  { %31 = vmax.xlane.f32.xlu0 %v30_v9 }
 0x123   :  { %v32_v11 = vpop.xlane.xlu0 %31 }
 0x124   :  { %vm33_vm2 = vcmp.eq.f32.partialorder %v28_v4, %v32_v11  ;;  %vm34_vm3 = vcmp.eq.f32.partialorder %v29_v5, %v32_v11 }
 0x125   :  { %v48_v12 = vsel %vm33_vm2, -inf, %v28_v4  ;;  %v49_v13 = vsel %vm34_vm3, -inf, %v29_v5  ;;  %v116_v14 = vsel %vm33_vm2, 1.0, %v125_v6  ;;  %v117_v15 = vsel %vm34_vm3, 1.0, %v125_v6 }
 0x126   :  { %v50_v16 = vmax.f32 %v48_v12, %v49_v13  ;;  %v39_v17 = vadd.f32 %v117_v15, %v116_v14 }
 0x128   :  { %51 = vmax.xlane.f32.xlu1 %v50_v16 }
 0x1b5   :  { %v52_v18 = vpop.xlane.xlu1 %51 }
 0x1b6   :  { %vm53_vm4 = vcmp.eq.f32.partialorder %v48_v12, %v52_v18  ;;  %vm54_vm5 = vcmp.eq.f32.partialorder %v49_v13, %v52_v18 }
 0x1b7   :  { %v68_v19 = vsel %vm53_vm4, -inf, %v48_v12  ;;  %v69_v20 = vsel %vm54_vm5, -inf, %v49_v13  ;;  %v118_v22 = vsel %vm53_vm4, 1.0, %v125_v6  ;;  %v119_v23 = vsel %vm54_vm5, 1.0, %v125_v6 }
 0x1b8   :  { %v70_v21 = vmax.f32 %v68_v19, %v69_v20  ;;  %v59_v24 = vadd.f32 %v119_v23, %v118_v22 }
 0x1ba   :  { %71 = vmax.xlane.f32.xlu1 %v70_v21 }
 0x1be   :  { %20 = vadd.xlane.f32.xlu1 %v19_v10 }
 0x1c2   :  { %60 = vadd.xlane.f32.xlu1 %v59_v24 }
 0x247   :  { %v72_v25 = vpop.xlane.xlu1 %71 }
 0x248   :  { %vm73_vm6 = vcmp.eq.f32.partialorder %v68_v19, %v72_v25  ;;  %vm74_vm7 = vcmp.eq.f32.partialorder %v69_v20, %v72_v25 }
 0x249   :  { %v88_v26 = vsel %vm73_vm6, -inf, %v68_v19  ;;  %v89_v27 = vsel %vm74_vm7, -inf, %v69_v20  ;;  %v120_v29 = vsel %vm73_vm6, 1.0, %v125_v6  ;;  %v121_v30 = vsel %vm74_vm7, 1.0, %v125_v6 }
 0x24a   :  { %v90_v28 = vmax.f32 %v88_v26, %v89_v27  ;;  %v79_v31 = vadd.f32 %v121_v30, %v120_v29 }
 0x24b   :  { %v21_v36 = vpop.xlane.xlu1 %20 }
 0x24c   :  { %91 = vmax.xlane.f32.xlu0 %v90_v28  ;;  %v22_v37 = vmin.f32 %v21_v36, 5.0 }
 0x24e   :  { %v27_v39 = vsub.f32 5.0, %v22_v37  ;;  %v25_v52 = vmul.f32 %v22_v37, %v142_v3 }
 0x24f   :  { %v61_v42 = vpop.xlane.xlu1 %60 }
 0x250   :  { %40 = vadd.xlane.f32.xlu0 %v39_v17  ;;  %vm43_vm10 = vcmp.gt.f32.partialorder %v27_v39, 0.0 }
 0x251   :  { %v44_v47 = vsel %vm43_vm10, %v32_v11, 0.0 }
 0x254   :  { %80 = vadd.xlane.f32.xlu0 %v79_v31 }
 0x2d9   :  { %v92_v32 = vpop.xlane.xlu0 %91 }
 0x2da   :  { %vm93_vm8 = vcmp.eq.f32.partialorder %v88_v26, %v92_v32  ;;  %vm94_vm9 = vcmp.eq.f32.partialorder %v89_v27, %v92_v32 }
 0x2db   :  { %v122_v33 = vsel %vm93_vm8, 1.0, %v125_v6  ;;  %v123_v34 = vsel %vm94_vm9, 1.0, %v125_v6 }
 0x2dc   :  { %v99_v35 = vadd.f32 %v123_v34, %v122_v33 }
 0x2dd   :  { %v41_v38 = vpop.xlane.xlu0 %40 }
 0x2de   :  { %100 = vadd.xlane.f32.xlu1 %v99_v35  ;;  %v42_v40 = vmin.f32 %v41_v38, %v27_v39 }
 0x2e0   :  { %v47_v41 = vsub.f32 %v27_v39, %v42_v40  ;;  %v45_v49 = vmul.f32 %v44_v47, %v42_v40 }
 0x2e1   :  { %v81_v45 = vpop.xlane.xlu0 %80 }
 0x2e2   :  { %v62_v43 = vmin.f32 %v61_v42, %v47_v41  ;;  %vm63_vm11 = vcmp.gt.f32.partialorder %v47_v41, 0.0  ;;  %v46_v54 = vadd.f32 %v45_v49, %v25_v52 }
 0x2e3   :  { %v64_v48 = vsel %vm63_vm11, %v52_v18, 0.0 }
 0x2e4   :  { %v67_v44 = vsub.f32 %v47_v41, %v62_v43  ;;  %v65_v53 = vmul.f32 %v64_v48, %v62_v43 }
 0x2e6   :  { %v82_v46 = vmin.f32 %v81_v45, %v67_v44  ;;  %vm83_vm12 = vcmp.gt.f32.partialorder %v67_v44, 0.0  ;;  %v66_v57 = vadd.f32 %v65_v53, %v46_v54 }
 0x2e7   :  { %v84_v51 = vsel %vm83_vm12, %v72_v25, 0.0 }
 0x2e8   :  { %v87_v50 = vsub.f32 %v67_v44, %v82_v46  ;;  %v85_v55 = vmul.f32 %v84_v51, %v82_v46 }
 0x2ea   :  { %vm103_vm13 = vcmp.gt.f32.partialorder %v87_v50, 0.0  ;;  %v86_v60 = vadd.f32 %v85_v55, %v66_v57 }
 0x2eb   :  { %v104_v59 = vsel %vm103_vm13, %v92_v32, 0.0 }
 0x36b   :  { %v101_v56 = vpop.xlane.xlu1 %100 }
 0x36c   :  { %v102_v58 = vmin.f32 %v101_v56, %v87_v50 }
 0x36e   :  { %v105_v61 = vmul.f32 %v104_v59, %v102_v58 }
 0x370   :  { %v106_v62 = vadd.f32 %v105_v61, %v86_v60 }
 0x372   :  { %v107_v63 = vmul.f32 0.2, %v106_v62 }
 0x374   :  { %109 = vst.msk [vmem:[%s151_s1] sm:$0xff] %vm108_vm14, %v107_v63 }

</bundles_post_ra>
